<compile_context>
chip_gen: v7x
topology: tpu7x:2x2x1
jax: 0.10.0
libtpu: 0.0.40
codegen_flags: <defaults>
</compile_context>

<pallas_src>
import functools

import numpy as np
import jax
import jax.numpy as jnp
from jax import lax
from jax.experimental import pallas as pl
from jax.experimental.pallas import tpu as pltpu

# ---- small, forward-consistent config (dim / n_heads / n_kv_heads / head_dim) ----
DIM = 32
N_HEADS = 4
N_KV_HEADS = 2
HEAD_DIM = DIM // N_HEADS          # 8
N_REP = N_HEADS // N_KV_HEADS      # 2
MAX_SEQ_LEN = 16
ROPE_THETA = 500000.0

Q_SIZE = N_HEADS * HEAD_DIM        # 32
KV_SIZE = N_KV_HEADS * HEAD_DIM    # 16
QKV_SIZE = Q_SIZE + 2 * KV_SIZE    # 64


# ----------------------------- fused Pallas kernel -------------------------------

def _fused_attention_kernel(x_ref, wqkv_ref, wo_ref, cos_ref, sin_ref,
                            ck_in_ref, cv_in_ref,
                            out_ref, ck_out_ref, cv_out_ref,
                            *, start_pos, seqlen):
    S = seqlen
    KV = start_pos + seqlen
    D = HEAD_DIM
    half = D // 2

    # ---- fused QKV projection: one MXU matmul for all of wq|wk|wv --------------
    x2d = x_ref[0]                                                    # (S, DIM)
    qkv = jnp.dot(x2d, wqkv_ref[...], preferred_element_type=jnp.float32)

    q_raw = qkv[:, :Q_SIZE]                        # scaled + de-interleaved per head
    k_raw = qkv[:, Q_SIZE:Q_SIZE + KV_SIZE]        # de-interleaved per head
    v_raw = qkv[:, Q_SIZE + KV_SIZE:]              # untouched layout

    c = cos_ref[...]                                                  # (S, half)
    sn = sin_ref[...]                                                 # (S, half)

    def rope_head(x2, h):
        # per-head layout is already [even(real) | odd(imag)] thanks to the weight
        # permutation, so RoPE is pure elementwise math; output layout matches the
        # torch reference's concatenated halves exactly.
        base = h * D
        re = x2[:, base:base + half]
        im = x2[:, base + half:base + D]
        return jnp.concatenate([re * c - im * sn, re * sn + im * c], axis=-1)

    q_heads = [rope_head(q_raw, h) for h in range(N_HEADS)]           # (S, D) each
    k_heads = [rope_head(k_raw, g) for g in range(N_KV_HEADS)]
    v_heads = [v_raw[:, g * D:(g + 1) * D] for g in range(N_KV_HEADS)]

    # ---- KV-cache write-back (HBM buffer aliased in place) ---------------------
    ck_out_ref[...] = ck_in_ref[...]
    cv_out_ref[...] = cv_in_ref[...]
    for g in range(N_KV_HEADS):
        ck_out_ref[0, g, pl.ds(start_pos, S), :] = k_heads[g]
        cv_out_ref[0, g, pl.ds(start_pos, S), :] = v_heads[g]

    # ---- causal mask generated in-kernel (no HBM mask input) -------------------
    row_pos = lax.broadcasted_iota(jnp.int32, (N_REP * S, KV), 0) % S
    col_pos = lax.broadcasted_iota(jnp.int32, (N_REP * S, KV), 1)
    allowed = col_pos <= (row_pos + start_pos)
    neg = jnp.finfo(jnp.float32).min

    # ---- GQA attention: the n_rep query heads of a KV group are stacked along
    #      the M (sublane) dim so each score matmul covers a whole group ---------
    # TODO(synk): for real LLaMA sizes add a KV grid axis with flash-style online
    #             softmax so K/V tiles stay bounded on v7x's 64 MiB VMEM.
    head_out = [None] * N_HEADS
    for g in range(N_KV_HEADS):
        if start_pos > 0:
            k_g = jnp.concatenate(
                [ck_in_ref[0, g, pl.ds(0, start_pos), :], k_heads[g]], axis=0)
            v_g = jnp.concatenate(
                [cv_in_ref[0, g, pl.ds(0, start_pos), :], v_heads[g]], axis=0)
        else:
            k_g, v_g = k_heads[g], v_heads[g]                         # (KV, D)

        q_grp = jnp.concatenate(
            [q_heads[g * N_REP + r] for r in range(N_REP)], axis=0)   # (N_REP*S, D)

        # contract last dims directly (no k.T materialization)
        s = lax.dot_general(q_grp, k_g, (((1,), (1,)), ((), ())),
                            preferred_element_type=jnp.float32)       # (N_REP*S, KV)
        s = jnp.where(allowed, s, neg)
        m = jnp.max(s, axis=-1, keepdims=True)
        p = jnp.exp(s - m)
        p = p * pl.reciprocal(jnp.sum(p, axis=-1, keepdims=True), approx=True)
        o = jnp.dot(p, v_g, preferred_element_type=jnp.float32)       # (N_REP*S, D)
        for r in range(N_REP):
            head_out[g * N_REP + r] = o[r * S:(r + 1) * S]

    # ---- output projection fused into the same kernel; lane-dense (S, DIM) store
    attn = jnp.concatenate(head_out, axis=-1)                         # (S, H*D)
    out = jnp.dot(attn, wo_ref[...], preferred_element_type=jnp.float32)
    out_ref[0] = out.astype(out_ref.dtype)


# ----------------------------- weight prep (done once) ----------------------------

def _prepare_weights(params):
    """Fold torch-layout weights into the kernel layout once (no per-forward .T)."""
    def deinterleave_perm(n_heads):
        idx = []
        for h in range(n_heads):
            base = h * HEAD_DIM
            idx += [base + 2 * j for j in range(HEAD_DIM // 2)]       # even -> real
            idx += [base + 2 * j + 1 for j in range(HEAD_DIM // 2)]   # odd  -> imag
        return np.asarray(idx)

    scale = 1.0 / (HEAD_DIM ** 0.5)   # torch SDPA default scale, folded into wq
    wq_t = params["wq"].T[:, deinterleave_perm(N_HEADS)] * scale
    wk_t = params["wk"].T[:, deinterleave_perm(N_KV_HEADS)]
    wv_t = params["wv"].T
    return {"wqkv": jnp.concatenate([wq_t, wk_t, wv_t], axis=1),      # (DIM, QKV_SIZE)
            "wo_t": params["wo"].T}                                   # (H*D, DIM)


# ----------------------------- forward wrapper ------------------------------------

@functools.partial(jax.jit, static_argnums=(2,))
def attention_forward(packed, x, start_pos, cache_k, cache_v, cos_tab, sin_tab):
    """Fused Attention.forward.  cache_{k,v}: (B, n_kv_heads, max_seq, head_dim)."""
    bsz, seqlen, dim = x.shape
    cos_s = cos_tab[start_pos:start_pos + seqlen].astype(jnp.float32)
    sin_s = sin_tab[start_pos:start_pos + seqlen].astype(jnp.float32)

    kernel = functools.partial(_fused_attention_kernel,
                               start_pos=start_pos, seqlen=seqlen)
    cache_block = (1, N_KV_HEADS, MAX_SEQ_LEN, HEAD_DIM)

    out, new_ck, new_cv = pl.pallas_call(
        kernel,
        grid=(bsz,),
        out_shape=(
            jax.ShapeDtypeStruct((bsz, seqlen, dim), x.dtype),
            jax.ShapeDtypeStruct(cache_k.shape, cache_k.dtype),
            jax.ShapeDtypeStruct(cache_v.shape, cache_v.dtype),
        ),
        in_specs=[
            pl.BlockSpec((1, seqlen, dim), lambda b: (b, 0, 0)),              # x
            pl.BlockSpec((DIM, QKV_SIZE), lambda b: (0, 0)),                  # packed wqkv
            pl.BlockSpec((Q_SIZE, DIM), lambda b: (0, 0)),                    # wo (in,out)
            pl.BlockSpec((seqlen, HEAD_DIM // 2), lambda b: (0, 0)),          # cos
            pl.BlockSpec((seqlen, HEAD_DIM // 2), lambda b: (0, 0)),          # sin
            pl.BlockSpec(cache_block, lambda b: (b, 0, 0, 0)),                # cache_k
            pl.BlockSpec(cache_block, lambda b: (b, 0, 0, 0)),                # cache_v
        ],
        out_specs=(
            pl.BlockSpec((1, seqlen, dim), lambda b: (b, 0, 0)),
            pl.BlockSpec(cache_block, lambda b: (b, 0, 0, 0)),
            pl.BlockSpec(cache_block, lambda b: (b, 0, 0, 0)),
        ),
        # cache update is aliased in place (no fresh HBM cache buffers)
        input_output_aliases={5: 1, 6: 2},
        compiler_params=pltpu.CompilerParams(
            dimension_semantics=("parallel",)),    # batch axis shards across v7x TCs
    )(x, packed["wqkv"], packed["wo_t"], cos_s, sin_s, cache_k, cache_v)
    return out, new_ck, new_cv


# ----------------------------- RoPE tables + pure-JAX reference -------------------

def precompute_freqs_cis_real(dim, end, theta):
    freqs = 1.0 / (theta ** (jnp.arange(0, dim, 2)[: dim // 2].astype(jnp.float32) / dim))
    t = jnp.arange(end, dtype=jnp.float32)
    freqs = jnp.outer(t, freqs)
    return jnp.cos(freqs).astype(jnp.float16), jnp.sin(freqs).astype(jnp.float16)


def _apply_rotary_emb_ref(x, cos_vals, sin_vals):
    x_real = x[..., 0::2]
    x_imag = x[..., 1::2]
    c = cos_vals.reshape(1, x.shape[1], 1, x.shape[-1] // 2)
    s = sin_vals.reshape(1, x.shape[1], 1, x.shape[-1] // 2)
    out_real = x_real * c - x_imag * s
    out_imag = x_real * s + x_imag * c
    return jnp.concatenate([out_real, out_imag], axis=-1).astype(x.dtype)


def reference_forward(params, x, start_pos, cache_k, cache_v, mask, cos, sin):
    bsz, seqlen, _ = x.shape
    xq = (x @ params["wq"].T).reshape(bsz, seqlen, N_HEADS, HEAD_DIM)
    xk = (x @ params["wk"].T).reshape(bsz, seqlen, N_KV_HEADS, HEAD_DIM)
    xv = (x @ params["wv"].T).reshape(bsz, seqlen, N_KV_HEADS, HEAD_DIM)
    cos_s = cos[start_pos:start_pos + seqlen].astype(jnp.float32)
    sin_s = sin[start_pos:start_pos + seqlen].astype(jnp.float32)
    xq = _apply_rotary_emb_ref(xq, cos_s, sin_s)
    xk = _apply_rotary_emb_ref(xk, cos_s, sin_s)
    # TODO(synk): KVCache.update_and_fetch is a stateful module not defined in the
    # reference snippet; reproduced functionally (write slice + fetch prefix).
    cache_k = jax.lax.dynamic_update_slice(cache_k, xk, (0, start_pos, 0, 0))
    cache_v = jax.lax.dynamic_update_slice(cache_v, xv, (0, start_pos, 0, 0))
    keys = jnp.repeat(cache_k[:, : start_pos + seqlen], N_REP, axis=2)
    values = jnp.repeat(cache_v[:, : start_pos + seqlen], N_REP, axis=2)
    q = jnp.transpose(xq, (0, 2, 1, 3))
    k = jnp.transpose(keys, (0, 2, 1, 3))
    v = jnp.transpose(values, (0, 2, 1, 3))
    scores = jnp.einsum("bhsd,bhkd->bhsk", q, k) / (HEAD_DIM ** 0.5) + mask
    p = jax.nn.softmax(scores, axis=-1)
    out = jnp.einsum("bhsk,bhkd->bhsd", p, v)
    out = jnp.transpose(out, (0, 2, 1, 3)).reshape(bsz, seqlen, -1)
    return out @ params["wo"].T, cache_k, cache_v


# ----------------------------- main -----------------------------------------------

if __name__ == "__main__":
    key = jax.random.PRNGKey(0)
    kx, kq, kk, kv_, ko = jax.random.split(key, 5)

    bsz, seqlen = 2, 8
    start_pos = 0

    x = jax.random.normal(kx, (bsz, seqlen, DIM), dtype=jnp.float32)
    params = {
        "wq": 0.02 * jax.random.normal(kq, (N_HEADS * HEAD_DIM, DIM), dtype=jnp.float32),
        "wk": 0.02 * jax.random.normal(kk, (N_KV_HEADS * HEAD_DIM, DIM), dtype=jnp.float32),
        "wv": 0.02 * jax.random.normal(kv_, (N_KV_HEADS * HEAD_DIM, DIM), dtype=jnp.float32),
        "wo": 0.02 * jax.random.normal(ko, (DIM, N_HEADS * HEAD_DIM), dtype=jnp.float32),
    }
    packed = _prepare_weights(params)   # one-time fold: transpose + permute + scale + concat

    cos, sin = precompute_freqs_cis_real(HEAD_DIM, MAX_SEQ_LEN * 2, ROPE_THETA)

    # Pallas KV-cache layout: (B, n_kv_heads, max_seq, head_dim)
    cache_k = jnp.zeros((bsz, N_KV_HEADS, MAX_SEQ_LEN, HEAD_DIM), dtype=jnp.float32)
    cache_v = jnp.zeros_like(cache_k)

    out, new_ck, new_cv = attention_forward(packed, x, start_pos, cache_k, cache_v, cos, sin)
    out = jax.block_until_ready(out)

    # pure-JAX reference in the original module layout (mask assumed causal;
    # the kernel generates that causal mask internally).
    ref_cache_k = jnp.zeros((bsz, MAX_SEQ_LEN, N_KV_HEADS, HEAD_DIM), dtype=jnp.float32)
    ref_cache_v = jnp.zeros_like(ref_cache_k)
    mask = jnp.triu(jnp.full((seqlen, seqlen), float("-inf"), dtype=jnp.float32), k=1)
    mask = jnp.concatenate(
        [jnp.zeros((seqlen, start_pos), dtype=jnp.float32), mask], axis=1
    )
    ref, ref_ck, ref_cv = reference_forward(
        params, x, start_pos, ref_cache_k, ref_cache_v, mask, cos, sin)
    ref = jax.block_until_ready(ref)

    assert out.shape == (bsz, seqlen, DIM) and out.dtype == jnp.float32
    assert np.allclose(np.asarray(out), np.asarray(ref), atol=1e-2, rtol=1e-2), (
        "Pallas output mismatch vs pure-JAX reference"
    )
    assert np.allclose(np.transpose(np.asarray(new_ck), (0, 2, 1, 3)),
                       np.asarray(ref_ck), atol=1e-2, rtol=1e-2), "K-cache mismatch"
    assert np.allclose(np.transpose(np.asarray(new_cv), (0, 2, 1, 3)),
                       np.asarray(ref_cv), atol=1e-2, rtol=1e-2), "V-cache mismatch"
    print("KERNEL_OK")
</pallas_src>

<mosaic_0001>
module attributes {stable_mosaic.version = 11 : i64} {
  func.func @_fused_attention_kernel(%arg0: i32, %arg1: memref<1x8x32xf32, #tpu.memory_space<vmem>>, %arg2: memref<32x64xf32, #tpu.memory_space<vmem>>, %arg3: memref<32x32xf32, #tpu.memory_space<vmem>>, %arg4: memref<8x4xf32, #tpu.memory_space<vmem>>, %arg5: memref<8x4xf32, #tpu.memory_space<vmem>>, %arg6: memref<1x2x16x8xf32, #tpu.memory_space<vmem>>, %arg7: memref<1x2x16x8xf32, #tpu.memory_space<vmem>>, %arg8: memref<1x8x32xf32, #tpu.memory_space<vmem>>, %arg9: memref<1x2x16x8xf32, #tpu.memory_space<vmem>>, %arg10: memref<1x2x16x8xf32, #tpu.memory_space<vmem>>) attributes {dimension_semantics = [#tpu.dimension_semantics<parallel>], iteration_bounds = array<i64: 2>, scalar_prefetch = 0 : i64, scratch_operands = 0 : i64, tpu.core_type = #tpu.core_type<tc>, window_params = [{transform_indices = @transform_0, window_bounds = array<i64: 1, 8, 32>}, {pipeline_mode = #tpu.pipeline_mode<synchronous>, transform_indices = @transform_1, window_bounds = array<i64: 32, 64>}, {pipeline_mode = #tpu.pipeline_mode<synchronous>, transform_indices = @transform_2, window_bounds = array<i64: 32, 32>}, {pipeline_mode = #tpu.pipeline_mode<synchronous>, transform_indices = @transform_3, window_bounds = array<i64: 8, 4>}, {pipeline_mode = #tpu.pipeline_mode<synchronous>, transform_indices = @transform_4, window_bounds = array<i64: 8, 4>}, {transform_indices = @transform_5, window_bounds = array<i64: 1, 2, 16, 8>}, {transform_indices = @transform_6, window_bounds = array<i64: 1, 2, 16, 8>}, {transform_indices = @transform_7, window_bounds = array<i64: 1, 8, 32>}, {transform_indices = @transform_8, window_bounds = array<i64: 1, 2, 16, 8>}, {transform_indices = @transform_9, window_bounds = array<i64: 1, 2, 16, 8>}]} {
    %c0 = arith.constant 0 : index
    %c0_0 = arith.constant 0 : index
    %c0_1 = arith.constant 0 : index
    %0 = vector.load %arg1[%c0, %c0_0, %c0_1] : memref<1x8x32xf32, #tpu.memory_space<vmem>>, vector<1x8x32xf32>
    %1 = vector.shape_cast %0 : vector<1x8x32xf32> to vector<8x32xf32>
    %c0_2 = arith.constant 0 : index
    %c0_3 = arith.constant 0 : index
    %2 = vector.load %arg2[%c0_2, %c0_3] : memref<32x64xf32, #tpu.memory_space<vmem>>, vector<32x64xf32>
    %cst = arith.constant dense<0.000000e+00> : vector<8x64xf32>
    %3 = tpu.matmul %1, %2, %cst {dimension_numbers = #tpu.dot_dimension_numbers<[1], [0], [0], [1], [0, 0, 1, 1], [], []>} : vector<8x32xf32>, vector<32x64xf32>, vector<8x64xf32> -> vector<8x64xf32>
    %4 = vector.extract_strided_slice %3 {offsets = [0, 0], sizes = [8, 32], strides = [1, 1]} : vector<8x64xf32> to vector<8x32xf32>
    %5 = vector.extract_strided_slice %3 {offsets = [0, 32], sizes = [8, 16], strides = [1, 1]} : vector<8x64xf32> to vector<8x16xf32>
    %6 = vector.extract_strided_slice %3 {offsets = [0, 48], sizes = [8, 16], strides = [1, 1]} : vector<8x64xf32> to vector<8x16xf32>
    %c0_4 = arith.constant 0 : index
    %c0_5 = arith.constant 0 : index
    %7 = vector.load %arg4[%c0_4, %c0_5] : memref<8x4xf32, #tpu.memory_space<vmem>>, vector<8x4xf32>
    %c0_6 = arith.constant 0 : index
    %c0_7 = arith.constant 0 : index
    %8 = vector.load %arg5[%c0_6, %c0_7] : memref<8x4xf32, #tpu.memory_space<vmem>>, vector<8x4xf32>
    %9 = vector.extract_strided_slice %4 {offsets = [0, 0], sizes = [8, 4], strides = [1, 1]} : vector<8x32xf32> to vector<8x4xf32>
    %10 = vector.extract_strided_slice %4 {offsets = [0, 4], sizes = [8, 4], strides = [1, 1]} : vector<8x32xf32> to vector<8x4xf32>
    %11 = arith.mulf %9, %7 : vector<8x4xf32>
    %12 = arith.mulf %10, %8 : vector<8x4xf32>
    %13 = arith.subf %11, %12 : vector<8x4xf32>
    %14 = arith.mulf %9, %8 : vector<8x4xf32>
    %15 = arith.mulf %10, %7 : vector<8x4xf32>
    %16 = arith.addf %14, %15 : vector<8x4xf32>
    %17 = tpu.concatenate %13, %16 in 1 : vector<8x4xf32>, vector<8x4xf32> -> vector<8x8xf32>
    %18 = vector.extract_strided_slice %4 {offsets = [0, 8], sizes = [8, 4], strides = [1, 1]} : vector<8x32xf32> to vector<8x4xf32>
    %19 = vector.extract_strided_slice %4 {offsets = [0, 12], sizes = [8, 4], strides = [1, 1]} : vector<8x32xf32> to vector<8x4xf32>
    %20 = arith.mulf %18, %7 : vector<8x4xf32>
    %21 = arith.mulf %19, %8 : vector<8x4xf32>
    %22 = arith.subf %20, %21 : vector<8x4xf32>
    %23 = arith.mulf %18, %8 : vector<8x4xf32>
    %24 = arith.mulf %19, %7 : vector<8x4xf32>
    %25 = arith.addf %23, %24 : vector<8x4xf32>
    %26 = tpu.concatenate %22, %25 in 1 : vector<8x4xf32>, vector<8x4xf32> -> vector<8x8xf32>
    %27 = vector.extract_strided_slice %4 {offsets = [0, 16], sizes = [8, 4], strides = [1, 1]} : vector<8x32xf32> to vector<8x4xf32>
    %28 = vector.extract_strided_slice %4 {offsets = [0, 20], sizes = [8, 4], strides = [1, 1]} : vector<8x32xf32> to vector<8x4xf32>
    %29 = arith.mulf %27, %7 : vector<8x4xf32>
    %30 = arith.mulf %28, %8 : vector<8x4xf32>
    %31 = arith.subf %29, %30 : vector<8x4xf32>
    %32 = arith.mulf %27, %8 : vector<8x4xf32>
    %33 = arith.mulf %28, %7 : vector<8x4xf32>
    %34 = arith.addf %32, %33 : vector<8x4xf32>
    %35 = tpu.concatenate %31, %34 in 1 : vector<8x4xf32>, vector<8x4xf32> -> vector<8x8xf32>
    %36 = vector.extract_strided_slice %4 {offsets = [0, 24], sizes = [8, 4], strides = [1, 1]} : vector<8x32xf32> to vector<8x4xf32>
    %37 = vector.extract_strided_slice %4 {offsets = [0, 28], sizes = [8, 4], strides = [1, 1]} : vector<8x32xf32> to vector<8x4xf32>
    %38 = arith.mulf %36, %7 : vector<8x4xf32>
    %39 = arith.mulf %37, %8 : vector<8x4xf32>
    %40 = arith.subf %38, %39 : vector<8x4xf32>
    %41 = arith.mulf %36, %8 : vector<8x4xf32>
    %42 = arith.mulf %37, %7 : vector<8x4xf32>
    %43 = arith.addf %41, %42 : vector<8x4xf32>
    %44 = tpu.concatenate %40, %43 in 1 : vector<8x4xf32>, vector<8x4xf32> -> vector<8x8xf32>
    %45 = vector.extract_strided_slice %5 {offsets = [0, 0], sizes = [8, 4], strides = [1, 1]} : vector<8x16xf32> to vector<8x4xf32>
    %46 = vector.extract_strided_slice %5 {offsets = [0, 4], sizes = [8, 4], strides = [1, 1]} : vector<8x16xf32> to vector<8x4xf32>
    %47 = arith.mulf %45, %7 : vector<8x4xf32>
    %48 = arith.mulf %46, %8 : vector<8x4xf32>
    %49 = arith.subf %47, %48 : vector<8x4xf32>
    %50 = arith.mulf %45, %8 : vector<8x4xf32>
    %51 = arith.mulf %46, %7 : vector<8x4xf32>
    %52 = arith.addf %50, %51 : vector<8x4xf32>
    %53 = tpu.concatenate %49, %52 in 1 : vector<8x4xf32>, vector<8x4xf32> -> vector<8x8xf32>
    %54 = vector.extract_strided_slice %5 {offsets = [0, 8], sizes = [8, 4], strides = [1, 1]} : vector<8x16xf32> to vector<8x4xf32>
    %55 = vector.extract_strided_slice %5 {offsets = [0, 12], sizes = [8, 4], strides = [1, 1]} : vector<8x16xf32> to vector<8x4xf32>
    %56 = arith.mulf %54, %7 : vector<8x4xf32>
    %57 = arith.mulf %55, %8 : vector<8x4xf32>
    %58 = arith.subf %56, %57 : vector<8x4xf32>
    %59 = arith.mulf %54, %8 : vector<8x4xf32>
    %60 = arith.mulf %55, %7 : vector<8x4xf32>
    %61 = arith.addf %59, %60 : vector<8x4xf32>
    %62 = tpu.concatenate %58, %61 in 1 : vector<8x4xf32>, vector<8x4xf32> -> vector<8x8xf32>
    %63 = vector.extract_strided_slice %6 {offsets = [0, 0], sizes = [8, 8], strides = [1, 1]} : vector<8x16xf32> to vector<8x8xf32>
    %64 = vector.extract_strided_slice %6 {offsets = [0, 8], sizes = [8, 8], strides = [1, 1]} : vector<8x16xf32> to vector<8x8xf32>
    %c0_8 = arith.constant 0 : index
    %c0_9 = arith.constant 0 : index
    %c0_10 = arith.constant 0 : index
    %c0_11 = arith.constant 0 : index
    %65 = vector.load %arg6[%c0_8, %c0_9, %c0_10, %c0_11] : memref<1x2x16x8xf32, #tpu.memory_space<vmem>>, vector<1x2x16x8xf32>
    %c0_12 = arith.constant 0 : index
    %c0_13 = arith.constant 0 : index
    %c0_14 = arith.constant 0 : index
    %c0_15 = arith.constant 0 : index
    %66 = vector.load %arg9[%c0_12, %c0_13, %c0_14, %c0_15] : memref<1x2x16x8xf32, #tpu.memory_space<vmem>>, vector<1x2x16x8xf32>
    tpu.vector_store %arg9[%c0_12, %c0_13, %c0_14, %c0_15], %65 {strides = array<i32>} : memref<1x2x16x8xf32, #tpu.memory_space<vmem>>, vector<1x2x16x8xf32>,
    %c0_16 = arith.constant 0 : index
    %c0_17 = arith.constant 0 : index
    %c0_18 = arith.constant 0 : index
    %c0_19 = arith.constant 0 : index
    %67 = vector.load %arg7[%c0_16, %c0_17, %c0_18, %c0_19] : memref<1x2x16x8xf32, #tpu.memory_space<vmem>>, vector<1x2x16x8xf32>
    %c0_20 = arith.constant 0 : index
    %c0_21 = arith.constant 0 : index
    %c0_22 = arith.constant 0 : index
    %c0_23 = arith.constant 0 : index
    %68 = vector.load %arg10[%c0_20, %c0_21, %c0_22, %c0_23] : memref<1x2x16x8xf32, #tpu.memory_space<vmem>>, vector<1x2x16x8xf32>
    tpu.vector_store %arg10[%c0_20, %c0_21, %c0_22, %c0_23], %67 {strides = array<i32>} : memref<1x2x16x8xf32, #tpu.memory_space<vmem>>, vector<1x2x16x8xf32>,
    %c0_24 = arith.constant 0 : index
    %c0_25 = arith.constant 0 : index
    %c0_26 = arith.constant 0 : index
    %c0_27 = arith.constant 0 : index
    %69 = vector.load %arg9[%c0_24, %c0_25, %c0_26, %c0_27] : memref<1x2x16x8xf32, #tpu.memory_space<vmem>>, vector<1x1x8x8xf32>
    %70 = vector.shape_cast %69 : vector<1x1x8x8xf32> to vector<8x8xf32>
    %71 = vector.shape_cast %53 : vector<8x8xf32> to vector<1x1x8x8xf32>
    tpu.vector_store %arg9[%c0_24, %c0_25, %c0_26, %c0_27], %71 {strides = array<i32>} : memref<1x2x16x8xf32, #tpu.memory_space<vmem>>, vector<1x1x8x8xf32>,
    %c0_28 = arith.constant 0 : index
    %c0_29 = arith.constant 0 : index
    %c0_30 = arith.constant 0 : index
    %c0_31 = arith.constant 0 : index
    %72 = vector.load %arg10[%c0_28, %c0_29, %c0_30, %c0_31] : memref<1x2x16x8xf32, #tpu.memory_space<vmem>>, vector<1x1x8x8xf32>
    %73 = vector.shape_cast %72 : vector<1x1x8x8xf32> to vector<8x8xf32>
    %74 = vector.shape_cast %63 : vector<8x8xf32> to vector<1x1x8x8xf32>
    tpu.vector_store %arg10[%c0_28, %c0_29, %c0_30, %c0_31], %74 {strides = array<i32>} : memref<1x2x16x8xf32, #tpu.memory_space<vmem>>, vector<1x1x8x8xf32>,
    %c0_32 = arith.constant 0 : index
    %c1 = arith.constant 1 : index
    %c0_33 = arith.constant 0 : index
    %c0_34 = arith.constant 0 : index
    %75 = vector.load %arg9[%c0_32, %c1, %c0_33, %c0_34] : memref<1x2x16x8xf32, #tpu.memory_space<vmem>>, vector<1x1x8x8xf32>
    %76 = vector.shape_cast %75 : vector<1x1x8x8xf32> to vector<8x8xf32>
    %77 = vector.shape_cast %62 : vector<8x8xf32> to vector<1x1x8x8xf32>
    tpu.vector_store %arg9[%c0_32, %c1, %c0_33, %c0_34], %77 {strides = array<i32>} : memref<1x2x16x8xf32, #tpu.memory_space<vmem>>, vector<1x1x8x8xf32>,
    %c0_35 = arith.constant 0 : index
    %c1_36 = arith.constant 1 : index
    %c0_37 = arith.constant 0 : index
    %c0_38 = arith.constant 0 : index
    %78 = vector.load %arg10[%c0_35, %c1_36, %c0_37, %c0_38] : memref<1x2x16x8xf32, #tpu.memory_space<vmem>>, vector<1x1x8x8xf32>
    %79 = vector.shape_cast %78 : vector<1x1x8x8xf32> to vector<8x8xf32>
    %80 = vector.shape_cast %64 : vector<8x8xf32> to vector<1x1x8x8xf32>
    tpu.vector_store %arg10[%c0_35, %c1_36, %c0_37, %c0_38], %80 {strides = array<i32>} : memref<1x2x16x8xf32, #tpu.memory_space<vmem>>, vector<1x1x8x8xf32>,
    %81 = tpu.iota {dimensions = array<i32: 0>} : vector<16x8xi32>
    %c8_i32 = arith.constant 8 : i32
    %c0_i32 = arith.constant 0 : i32
    %82 = arith.cmpi eq, %c8_i32, %c0_i32 : i32
    %c1_i32 = arith.constant 1 : i32
    %83 = arith.select %82, %c1_i32, %c8_i32 : i32
    %84 = vector.broadcast %83 : i32 to vector<16x8xi32>
    %85 = arith.remsi %81, %84 : vector<16x8xi32>
    %c0_i32_39 = arith.constant 0 : i32
    %86 = vector.broadcast %c0_i32_39 : i32 to vector<16x8xi32>
    %87 = arith.cmpi ne, %85, %86 : vector<16x8xi32>
    %c0_i32_40 = arith.constant 0 : i32
    %88 = vector.broadcast %c0_i32_40 : i32 to vector<16x8xi32>
    %89 = arith.cmpi slt, %85, %88 : vector<16x8xi32>
    %c0_i32_41 = arith.constant 0 : i32
    %90 = arith.cmpi slt, %83, %c0_i32_41 : i32
    %91 = vector.broadcast %90 : i1 to vector<16x8xi1>
    %92 = vector.broadcast %91 : vector<16x8xi1> to vector<16x8xi1>
    %93 = arith.xori %89, %92 : vector<16x8xi1>
    %94 = arith.andi %93, %87 : vector<16x8xi1>
    %95 = vector.broadcast %83 : i32 to vector<16x8xi32>
    %96 = arith.addi %85, %95 : vector<16x8xi32>
    %97 = arith.select %94, %96, %85 : vector<16x8xi1>, vector<16x8xi32>
    %98 = tpu.iota {dimensions = array<i32: 1>} : vector<16x8xi32>
    %c0_i32_42 = arith.constant 0 : i32
    %99 = vector.broadcast %c0_i32_42 : i32 to vector<16x8xi32>
    %100 = arith.addi %97, %99 : vector<16x8xi32>
    %101 = arith.cmpi sle, %98, %100 : vector<16x8xi32>
    %102 = tpu.concatenate %17, %26 in 0 : vector<8x8xf32>, vector<8x8xf32> -> vector<16x8xf32>
    %cst_43 = arith.constant dense<0.000000e+00> : vector<16x8xf32>
    %103 = tpu.matmul %102, %53, %cst_43 {dimension_numbers = #tpu.dot_dimension_numbers<[1], [1], [0], [0], [0, 0, 1, 0], [], []>} : vector<16x8xf32>, vector<8x8xf32>, vector<16x8xf32> -> vector<16x8xf32>
    %cst_44 = arith.constant -3.40282347E+38 : f32
    %104 = vector.broadcast %cst_44 : f32 to vector<16x8xf32>
    %105 = arith.select %101, %103, %104 : vector<16x8xi1>, vector<16x8xf32>
    %cst_45 = arith.constant dense<0xFF800000> : vector<16xf32>
    %106 = vector.multi_reduction <maximumf>, %105, %cst_45 [1] : vector<16x8xf32> to vector<16xf32>
    %107 = vector.shape_cast %106 : vector<16xf32> to vector<16x1xf32>
    %108 = vector.broadcast %107 : vector<16x1xf32> to vector<16x8xf32>
    %109 = arith.subf %105, %108 : vector<16x8xf32>
    %110 = math.exp %109 : vector<16x8xf32>
    %cst_46 = arith.constant dense<0.000000e+00> : vector<16xf32>
    %111 = vector.multi_reduction <add>, %110, %cst_46 [1] : vector<16x8xf32> to vector<16xf32>
    %112 = vector.shape_cast %111 : vector<16xf32> to vector<16x1xf32>
    %113 = tpu.reciprocal %112 {approx = true} : vector<16x1xf32> -> vector<16x1xf32>
    %114 = vector.broadcast %113 : vector<16x1xf32> to vector<16x8xf32>
    %115 = arith.mulf %110, %114 : vector<16x8xf32>
    %cst_47 = arith.constant dense<0.000000e+00> : vector<16x8xf32>
    %116 = tpu.matmul %115, %63, %cst_47 {dimension_numbers = #tpu.dot_dimension_numbers<[1], [0], [0], [1], [0, 0, 1, 1], [], []>} : vector<16x8xf32>, vector<8x8xf32>, vector<16x8xf32> -> vector<16x8xf32>
    %117 = vector.extract_strided_slice %116 {offsets = [0, 0], sizes = [8, 8], strides = [1, 1]} : vector<16x8xf32> to vector<8x8xf32>
    %118 = vector.extract_strided_slice %116 {offsets = [8, 0], sizes = [8, 8], strides = [1, 1]} : vector<16x8xf32> to vector<8x8xf32>
    %119 = tpu.concatenate %35, %44 in 0 : vector<8x8xf32>, vector<8x8xf32> -> vector<16x8xf32>
    %cst_48 = arith.constant dense<0.000000e+00> : vector<16x8xf32>
    %120 = tpu.matmul %119, %62, %cst_48 {dimension_numbers = #tpu.dot_dimension_numbers<[1], [1], [0], [0], [0, 0, 1, 0], [], []>} : vector<16x8xf32>, vector<8x8xf32>, vector<16x8xf32> -> vector<16x8xf32>
    %cst_49 = arith.constant -3.40282347E+38 : f32
    %121 = vector.broadcast %cst_49 : f32 to vector<16x8xf32>
    %122 = arith.select %101, %120, %121 : vector<16x8xi1>, vector<16x8xf32>
    %cst_50 = arith.constant dense<0xFF800000> : vector<16xf32>
    %123 = vector.multi_reduction <maximumf>, %122, %cst_50 [1] : vector<16x8xf32> to vector<16xf32>
    %124 = vector.shape_cast %123 : vector<16xf32> to vector<16x1xf32>
    %125 = vector.broadcast %124 : vector<16x1xf32> to vector<16x8xf32>
    %126 = arith.subf %122, %125 : vector<16x8xf32>
    %127 = math.exp %126 : vector<16x8xf32>
    %cst_51 = arith.constant dense<0.000000e+00> : vector<16xf32>
    %128 = vector.multi_reduction <add>, %127, %cst_51 [1] : vector<16x8xf32> to vector<16xf32>
    %129 = vector.shape_cast %128 : vector<16xf32> to vector<16x1xf32>
    %130 = tpu.reciprocal %129 {approx = true} : vector<16x1xf32> -> vector<16x1xf32>
    %131 = vector.broadcast %130 : vector<16x1xf32> to vector<16x8xf32>
    %132 = arith.mulf %127, %131 : vector<16x8xf32>
    %cst_52 = arith.constant dense<0.000000e+00> : vector<16x8xf32>
    %133 = tpu.matmul %132, %64, %cst_52 {dimension_numbers = #tpu.dot_dimension_numbers<[1], [0], [0], [1], [0, 0, 1, 1], [], []>} : vector<16x8xf32>, vector<8x8xf32>, vector<16x8xf32> -> vector<16x8xf32>
    %134 = vector.extract_strided_slice %133 {offsets = [0, 0], sizes = [8, 8], strides = [1, 1]} : vector<16x8xf32> to vector<8x8xf32>
    %135 = vector.extract_strided_slice %133 {offsets = [8, 0], sizes = [8, 8], strides = [1, 1]} : vector<16x8xf32> to vector<8x8xf32>
    %136 = tpu.concatenate %117, %118, %134, %135 in 1 : vector<8x8xf32>, vector<8x8xf32>, vector<8x8xf32>, vector<8x8xf32> -> vector<8x32xf32>
    %c0_53 = arith.constant 0 : index
    %c0_54 = arith.constant 0 : index
    %137 = vector.load %arg3[%c0_53, %c0_54] : memref<32x32xf32, #tpu.memory_space<vmem>>, vector<32x32xf32>
    %cst_55 = arith.constant dense<0.000000e+00> : vector<8x32xf32>
    %138 = tpu.matmul %136, %137, %cst_55 {dimension_numbers = #tpu.dot_dimension_numbers<[1], [0], [0], [1], [0, 0, 1, 1], [], []>} : vector<8x32xf32>, vector<32x32xf32>, vector<8x32xf32> -> vector<8x32xf32>
    %c0_56 = arith.constant 0 : index
    %c0_57 = arith.constant 0 : index
    %c0_58 = arith.constant 0 : index
    %139 = vector.load %arg8[%c0_56, %c0_57, %c0_58] : memref<1x8x32xf32, #tpu.memory_space<vmem>>, vector<1x8x32xf32>
    %140 = vector.shape_cast %139 : vector<1x8x32xf32> to vector<8x32xf32>
    %141 = vector.shape_cast %138 : vector<8x32xf32> to vector<1x8x32xf32>
    tpu.vector_store %arg8[%c0_56, %c0_57, %c0_58], %141 {strides = array<i32>} : memref<1x8x32xf32, #tpu.memory_space<vmem>>, vector<1x8x32xf32>,
    return
  }
  func.func @transform_0(%arg0: i32) -> (i32, i32, i32) {
    %c0_i32 = arith.constant 0 : i32
    %c0_i32_0 = arith.constant 0 : i32
    %c0_i32_1 = arith.constant 0 : i32
    return %arg0, %c0_i32, %c0_i32_0 : i32, i32, i32
  }
  func.func @transform_1(%arg0: i32) -> (i32, i32) {
    %c0_i32 = arith.constant 0 : i32
    %c0_i32_0 = arith.constant 0 : i32
    %c0_i32_1 = arith.constant 0 : i32
    return %c0_i32, %c0_i32_0 : i32, i32
  }
  func.func @transform_2(%arg0: i32) -> (i32, i32) {
    %c0_i32 = arith.constant 0 : i32
    %c0_i32_0 = arith.constant 0 : i32
    %c0_i32_1 = arith.constant 0 : i32
    return %c0_i32, %c0_i32_0 : i32, i32
  }
  func.func @transform_3(%arg0: i32) -> (i32, i32) {
    %c0_i32 = arith.constant 0 : i32
    %c0_i32_0 = arith.constant 0 : i32
    %c0_i32_1 = arith.constant 0 : i32
    return %c0_i32, %c0_i32_0 : i32, i32
  }
  func.func @transform_4(%arg0: i32) -> (i32, i32) {
    %c0_i32 = arith.constant 0 : i32
    %c0_i32_0 = arith.constant 0 : i32
    %c0_i32_1 = arith.constant 0 : i32
    return %c0_i32, %c0_i32_0 : i32, i32
  }
  func.func @transform_5(%arg0: i32) -> (i32, i32, i32, i32) {
    %c0_i32 = arith.constant 0 : i32
    %c0_i32_0 = arith.constant 0 : i32
    %c0_i32_1 = arith.constant 0 : i32
    %c0_i32_2 = arith.constant 0 : i32
    return %arg0, %c0_i32, %c0_i32_0, %c0_i32_1 : i32, i32, i32, i32
  }
  func.func @transform_6(%arg0: i32) -> (i32, i32, i32, i32) {
    %c0_i32 = arith.constant 0 : i32
    %c0_i32_0 = arith.constant 0 : i32
    %c0_i32_1 = arith.constant 0 : i32
    %c0_i32_2 = arith.constant 0 : i32
    return %arg0, %c0_i32, %c0_i32_0, %c0_i32_1 : i32, i32, i32, i32
  }
  func.func @transform_7(%arg0: i32) -> (i32, i32, i32) {
    %c0_i32 = arith.constant 0 : i32
    %c0_i32_0 = arith.constant 0 : i32
    %c0_i32_1 = arith.constant 0 : i32
    return %arg0, %c0_i32, %c0_i32_0 : i32, i32, i32
  }
  func.func @transform_8(%arg0: i32) -> (i32, i32, i32, i32) {
    %c0_i32 = arith.constant 0 : i32
    %c0_i32_0 = arith.constant 0 : i32
    %c0_i32_1 = arith.constant 0 : i32
    %c0_i32_2 = arith.constant 0 : i32
    return %arg0, %c0_i32, %c0_i32_0, %c0_i32_1 : i32, i32, i32, i32
  }
  func.func @transform_9(%arg0: i32) -> (i32, i32, i32, i32) {
    %c0_i32 = arith.constant 0 : i32
    %c0_i32_0 = arith.constant 0 : i32
    %c0_i32_1 = arith.constant 0 : i32
    %c0_i32_2 = arith.constant 0 : i32
    return %arg0, %c0_i32, %c0_i32_0, %c0_i32_1 : i32, i32, i32, i32
  }
}

</mosaic_0001>

<bundles_post_ra>
// kernel: attention_forward.1
= control target key start
LH: loop header
LB: loop body
LE: loop exit
PB: predicated region body
PF: predicated region fallthrough
CT: control target
= control target key end

     0   :  { %s2019_s0 = inlined_call_operand.vmem [shape: f32[2,8,32], index: 0, kind: input, shape index: {}]   ;;  %s2020_s1 = inlined_call_operand.vmem [shape: f32[32,64], index: 1, kind: input, shape index: {}]   ;;  %s2021_s2 = inlined_call_operand.vmem [shape: f32[32,32], index: 2, kind: input, shape index: {}]   ;;  %s2022_s3 = inlined_call_operand.vmem [shape: f32[8,4], index: 3, kind: input, shape index: {}]   ;;  %s2023_s4 = inlined_call_operand.vmem [shape: f32[8,4], index: 4, kind: input, shape index: {}]   ;;  %s2024_s5 = inlined_call_operand.vmem [shape: f32[2,2,16,8], index: 5, kind: input, shape index: {}, may-alias: {5,8}]   ;;  %s2025_s6 = inlined_call_operand.vmem [shape: f32[2,2,16,8], index: 6, kind: input, shape index: {}, may-alias: {6,9}]   ;;  %s2026_s7 = inlined_call_operand.hbm [shape: f32[2,8,32], index: 7, kind: output, shape index: {0}]   ;;  %s2027_s8 = inlined_call_operand.vmem [shape: f32[2,2,16,8], index: 8, kind: output, shape index: {1}, may-alias: {5,8}]   ;;  %s2028_s9 = inlined_call_operand.vmem [shape: f32[2,2,16,8], index: 9, kind: output, shape index: {2}, may-alias: {6,9}]  }
   0x1   :  { %2031 = sst [smem:[#allocation5_spill]] %s2020_s1 }
   0x2   :  { %2032 = sst [smem:[#allocation6_spill]] %s2022_s3 }
   0x3   :  { %2033 = sst [smem:[#allocation7_spill]] %s2023_s4 }
   0x4   :  { %15 = vsyncpa [#allocation3], 0 }
   0x5   :  { %17 = vsyncpa [#allocation3 + $0x1], 0  ;;  %s1708_s30 = smov 0   ;;  %s1710_s10 = smov 0  }
   0x6   :  { %s1712_s11 = smov 0   ;;  %s1714_s12 = smov 0  }
   0x7 LB: > { %s1729_s13 = sadd.s32 4294967295, %s1629_s12   ;;  %s1374_s14 = sadd.s32 4294967294, %s1629_s12   ;;  %s1629_s12 = sphi %s1714_s12, %s2047_s12   ;;  %s1625_s11 = sphi %s1712_s11, %s2046_s11   ;;  %s1621_s10 = sphi %s1710_s10, %s2045_s10   ;;  %s1617_s30 = sphi %s1708_s30, %s2044_s30  }
   0x8   : > { %s1733_s15 = sadd.s32 1, %s1629_s12   ;;  %s192_s16 = sadd.s32 1, %s1625_s11 }
   0x9   : > { %s189_s17 = ssub.s32 %s1629_s12, %s1733_s15  ;;  %p202_p0 = scmp.ne.s32.totalorder %s1625_s11, %s1621_s10 }
   0xa   : > { %p190_p1 = scmp.eq.s32.totalorder %s189_s17, 0  ;;  %p203_p2 = scmp.eq.s32.totalorder %s1729_s13, 1 }
   0xb   : > { %p208_p3 = scmp.ne.s32.totalorder %s1621_s10, %s1617_s30  ;;  %p209_p4 = scmp.eq.s32.totalorder %s1374_s14, 1 }
   0xc   : > { %s1744_s18 = scalar_select %p190_p1, %s1625_s11, %s192_s16  }
   0xd   : > { %p1746_p5 = por %p203_p2, %p202_p0  ;;  %p1750_p6 = por %p209_p4, %p208_p3 }
   0xe   : > { %p1377_p7 = scmp.ge.s32.totalorder %s1629_s12, 1  ;;  %p314_p8 = scmp.lt.s32.totalorder %s1629_s12, 3 }
  0x10   : > { %p315_p9 = pnand %p1377_p7, %p314_p8 }
  0x11   : > { %s2036_s1 = sld [smem:[#allocation5_spill]] (!%p315_p9)  ;;  %v1631_v3 = vmov (!%p315_p9), 0.0|0.0   ;;  %vm1632_vm0 = vmmov (!%p315_p9), 0   ;;  %v1633_v6 = vmov (!%p315_p9), 0.0   ;;  %p369_p10 = scmp.lt.s32.totalorder (!%p315_p9), %s1729_s13, 1  ;;  %vm681_vm1 = vcmask (!%p315_p9), 64512  }
  0x12   : > { %318 = sbr.rel (%p315_p9) target bundleno = 2153 (0x869), region = 48  ;;  %1474 = vmatprep.subr.bf16.mxu0 (!%p315_p9), %v1631_v3  ;;  %1440 = vmatprep.mubr.msk.f32.mxu0 (!%p315_p9), %vm1632_vm0, %v1633_v6  ;;  %s2037_s4 = sld [smem:[#allocation7_spill]] (!%p315_p9)  ;;  %vm398_vm2 = vcmask (!%p315_p9), 261120   ;;  %vm500_vm3 = vcmask (!%p315_p9), 31744   ;;  %v707_v63 = vlaneseq (!%p315_p9)  ;;  %vm1129_vm6 = vcmask (!%p315_p9), 130048  }
  0x13   : > { %s1634_s16 = smov (!%p315_p9), 36   ;;  %s2038_s3 = sld [smem:[#allocation6_spill]] (!%p315_p9)  ;;  %vm1131_vm7 = vcmask (!%p315_p9), 195584  }
  0x14   : > { %s2029_s23 = smov (!%p315_p9), 4   ;;  %s1640_s27 = smov (!%p315_p9), 100  }
  0x15   : > { %s1642_s29 = smov (!%p315_p9), 120   ;;  %s1643_s14 = smov (!%p315_p9), 44  }
  0x16   : > { %s1645_s21 = smov (!%p315_p9), 28   ;;  %s1648_s26 = smov (!%p315_p9), 24  }
  0x17   : > { %v394_v0 = vld [vmem:[%s2036_s1] sm:$0xff] (!%p315_p9)  ;;  %v395_v1 = vld [vmem:[%s2036_s1 + $0x8] sm:$0xff] (!%p315_p9)  ;;  %v396_v2 = vld [vmem:[%s2036_s1 + $0x10] sm:$0xff] (!%p315_p9) }
  0x18   : > { %v1475_v4 = vpack.c.bf16 (!%p315_p9), %v395_v1, %v394_v0  ;;  %v397_v5 = vld [vmem:[%s2036_s1 + $0x18] sm:$0xff] (!%p315_p9)  ;;  %v1774_v7 = vld [vmem:[%s2037_s4] sm:$0xff] (!%p315_p9)  ;;  %s2039_s4 = smov (!%p315_p9), 4   ;;  %v708_v0 = vshrl.u32 (!%p315_p9), %v707_v63, 7 }
  0x19   : > { %611 = vrot.lane.b32.xlu0 %v1774_v7, %s1634_s16  ;;  %v1780_v8 = vld [vmem:[%s2038_s3] sm:$0xff]  ;;  %v1478_v9 = vpack.c.bf16 %v397_v5, %v396_v2  ;;  %s370_s22 = scalar_select %p369_p10, %s1729_s13, 1 }
  0x1a   : > { %1476 = vmatpush3.bf16.msra.mxu0 %v1475_v4  ;;  %487 = vrot.lane.b32.xlu1 %v1780_v8, %s2029_s23  ;;  %s1637_s3 = smov 32   ;;  %v709_v1 = vadd.s32 8, %v708_v0  ;;  %v735_v4 = vand.u32 127, %v707_v63  ;;  %v714_v5 = vand.u32 7, %v708_v0 }
  0x1b   : > { %1477 = vmatprep.subr.bf16.mxu0 %v1631_v3  ;;  %s1379_s24 = sshll.u32 %s370_s22, 3  ;;  %s1406_s25 = sshll.u32 %s370_s22, 5 }
  0x1c   : > { %s372_s28 = scalar_lea.vmem %s2019_s0, %s1379_s24  ;;  %s377_s17 = scalar_lea.vmem %s2024_s5, %s1406_s25  ;;  %v721_v2 = vand.u32 7, %v709_v1  ;;  %vm1878_vm5 = vcmp.le.s32.totalorder %v735_v4, %v714_v5 }
  0x1d   : > { %624 = vrot.lane.b32.xlu0 %v1780_v8, %s1634_s16  ;;  %s382_s23 = scalar_lea.vmem %s2025_s6, %s1406_s25  ;;  %s1799_s22 = scalar_lea.vmem %s2027_s8, %s1406_s25  ;;  %v393_v10 = vld [vmem:[%s372_s28] sm:$0xff]  ;;  %v678_v12 = vld [vmem:[%s377_s17 + $0x8] sm:$0xff]  ;;  %v679_v13 = vld [vmem:[%s377_s17 + $0x10] sm:$0xff] }
  0x1e   : > { %1479 = vmatpush3.bf16.msra.mxu0 %v1478_v9  ;;  %v677_v11 = vld [vmem:[%s377_s17] sm:$0xff]  ;;  %s1636_s24 = smov 12   ;;  %s1805_s1 = scalar_lea.vmem %s2028_s9, %s1406_s25  ;;  %v680_v14 = vld [vmem:[%s377_s17 + $0x18] sm:$0xff]  ;;  %v687_v16 = vld [vmem:[%s382_s23 + $0x8] sm:$0xff]  ;;  %vm1874_vm4 = vcmp.le.s32.totalorder %v735_v4, %v721_v2 }
  0x1f   : > { %506 = vrot.lane.b32.xlu1 %v1774_v7, %s1636_s24  ;;  %v686_v15 = vld [vmem:[%s382_s23] sm:$0xff]  ;;  %1480 = vmatprep.subr.bf16.mxu0 %v1631_v3  ;;  %682 = vst.msk [vmem:[%s1799_s22] sm:$0xff] %vm681_vm1, %v677_v11  ;;  %683 = vst.msk [vmem:[%s1799_s22 + $0x8] sm:$0xff] %vm681_vm1, %v678_v12  ;;  %s1639_s25 = smov 124   ;;  %s1641_s28 = smov 96  }
  0x20   : > { %684 = vst.msk [vmem:[%s1799_s22 + $0x10] sm:$0xff] %vm681_vm1, %v679_v13  ;;  %685 = vst.msk [vmem:[%s1799_s22 + $0x18] sm:$0xff] %vm681_vm1, %v680_v14  ;;  %v688_v17 = vld [vmem:[%s382_s23 + $0x10] sm:$0xff]  ;;  %v689_v18 = vld [vmem:[%s382_s23 + $0x18] sm:$0xff]  ;;  %s1638_s23 = smov 8   ;;  %s1644_s17 = smov 20  }
  0x21   : > { %1441 = vmatmul.mubr.msk.f32.vlgmr.msra.gmra.mrb[0].mxu0 %vm398_vm2, %v393_v10  ;;  %690 = vst.msk [vmem:[%s1805_s1] sm:$0xff] %vm681_vm1, %v686_v15  ;;  %691 = vst.msk [vmem:[%s1805_s1 + $0x8] sm:$0xff] %vm681_vm1, %v687_v16  ;;  %519 = vrot.lane.b32.xlu0 %v1780_v8, %s1636_s24  ;;  %s1646_s24 = smov 40   ;;  %s1647_s16 = smov 16  }
  0x22   : > { %692 = vst.msk [vmem:[%s1805_s1 + $0x10] sm:$0xff] %vm681_vm1, %v688_v17  ;;  %693 = vst.msk [vmem:[%s1805_s1 + $0x18] sm:$0xff] %vm681_vm1, %v689_v18  ;;  %1471 = vmatprep.mubr.msk.f32.mxu0 %vm1632_vm0, %v1633_v6 }
  0x23   : > { %607 = vrot.lane.b32.xlu1 %v1780_v8, %s1637_s3 }
  0x25   : > { %620 = vrot.lane.b32.xlu0 %v1774_v7, %s1637_s3  ;;  %s1649_s3 = smov 80  }
  0x27   : > { %476 = vrot.lane.b32.xlu1 %v1774_v7, %s2039_s4 }
  0x29   : > { %502 = vrot.lane.b32.xlu0 %v1780_v8, %s1638_s23 }
  0x2b   : > { %515 = vrot.lane.b32.xlu1 %v1774_v7, %s1638_s23 }
  0x8b   : > { %v612_v20 = vpop.permute.xlu0 %611 }
  0x8c   : > { %v488_v19 = vpop.permute.xlu1 %487 }
  0x8f   : > { %v625_v22 = vpop.permute.xlu0 %624 }
  0x91   : > { %v507_v21 = vpop.permute.xlu1 %506 }
  0x93   : > { %v520_v30 = vpop.permute.xlu0 %519 }
  0x95   : > { %v608_v27 = vpop.permute.xlu1 %607 }
  0x97   : > { %v621_v34 = vpop.permute.xlu0 %620 }
  0x99   : > { %v477_v31 = vpop.permute.xlu1 %476 }
  0x9b   : > { %v503_v36 = vpop.permute.xlu0 %502 }
  0x9d   : > { %v516_v35 = vpop.permute.xlu1 %515 }
  0xf4   : > { %v1835_v23 = vpop.f32.mrb[0].mxu0 }
  0xf5   : > { %v1442_v24 = vpop.f32.mrb[1].mxu0  ;;  %v627_v25 = vmul.f32 %v625_v22, %v1835_v23  ;;  %v614_v26 = vmul.f32 %v612_v20, %v1835_v23  ;;  %v509_v28 = vmul.f32 %v507_v21, %v1835_v23  ;;  %v490_v29 = vmul.f32 %v488_v19, %v1835_v23 }
  0xf6   : > { %v522_v32 = vmul.f32 %v520_v30, %v1835_v23  ;;  %v479_v33 = vmul.f32 %v477_v31, %v1835_v23  ;;  %v623_v37 = vmul.f32 %v621_v34, %v1835_v23  ;;  %v610_v38 = vmul.f32 %v608_v27, %v1835_v23 }
  0xf7   : > { %629 = vrot.lane.b32.xlu0 %v627_v25, %s1639_s25  ;;  %616 = vrot.lane.b32.xlu1 %v614_v26, %s1639_s25  ;;  %v505_v43 = vmul.f32 %v503_v36, %v1835_v23  ;;  %v485_v44 = vmul.f32 %v1774_v7, %v1835_v23  ;;  %v518_v49 = vmul.f32 %v516_v35, %v1835_v23 }
  0xf8   : > { %v474_v55 = vmul.f32 %v1780_v8, %v1835_v23 }
  0xfb   : > { %511 = vrot.lane.b32.xlu1 %v509_v28, %s1639_s25  ;;  %492 = vrot.lane.b32.xlu0 %v490_v29, %s1639_s25 }
  0xff   : > { %524 = vrot.lane.b32.xlu0 %v522_v32, %s1639_s25  ;;  %481 = vrot.lane.b32.xlu1 %v479_v33, %s1639_s25 }
 0x169   : > { %v630_v39 = vpop.permute.xlu0 %629  ;;  %v617_v40 = vpop.permute.xlu1 %616 }
 0x16a   : > { %v632_v41 = vadd.f32 %v630_v39, %v623_v37  ;;  %v619_v42 = vsub.f32 %v610_v38, %v617_v40 }
 0x16c   : > { %638 = vrot.lane.b32.xlu0 %v632_v41, %s1640_s27  ;;  %634 = vrot.lane.b32.xlu1 %v619_v42, %s1641_s28  ;;  %s1652_s27 = smov 116   ;;  %s1653_s28 = smov 112  }
 0x16d   : > { %v512_v45 = vpop.permute.xlu1 %511  ;;  %v493_v46 = vpop.permute.xlu0 %492 }
 0x16e   : > { %v514_v47 = vsub.f32 %v505_v43, %v512_v45  ;;  %v495_v48 = vadd.f32 %v493_v46, %v485_v44 }
 0x170   : > { %497 = vrot.lane.b32.xlu0 %v495_v48, %s2039_s4  ;;  %529 = vrot.lane.b32.xlu1 %v514_v47, %s1642_s29  ;;  %s1650_s4 = smov 88   ;;  %s1654_s29 = smov 108  }
 0x171   : > { %v525_v50 = vpop.permute.xlu0 %524  ;;  %v482_v52 = vpop.permute.xlu1 %481 }
 0x172   : > { %v527_v51 = vadd.f32 %v525_v50, %v518_v49  ;;  %v484_v57 = vsub.f32 %v474_v55, %v482_v52 }
 0x174   : > { %533 = vrot.lane.b32.xlu0 %v527_v51, %s1639_s25  ;;  %646 = vrot.lane.b32.xlu1 %v1774_v7, %s1643_s14 }
 0x178   : > { %659 = vrot.lane.b32.xlu0 %v1780_v8, %s1643_s14  ;;  %541 = vrot.lane.b32.xlu1 %v1774_v7, %s1644_s17  ;;  %s1655_s14 = smov 104  }
 0x17c   : > { %554 = vrot.lane.b32.xlu0 %v1780_v8, %s1644_s17  ;;  %576 = vrot.lane.b32.xlu1 %v1774_v7, %s1645_s21 }
 0x180   : > { %589 = vrot.lane.b32.xlu0 %v1780_v8, %s1645_s21 }
 0x1de   : > { %v639_v53 = vpop.permute.xlu0 %638  ;;  %v635_v54 = vpop.permute.xlu1 %634 }
 0x1df   : > { %v641_v56 = vsel %vm500_vm3, %v635_v54, %v639_v53 }
 0x1e0   : > { %694 = vst.msk [vmem:[%s1799_s22] sm:$0xff] %vm681_vm1, %v641_v56  ;;  %1443 = vmatprep.subr.msk.mxu1 %vm681_vm1, %v641_v56 }
 0x1e1   : > { %1444 = vmatpush3.xpose.msk.msra.mxu1 %vm681_vm1, %v641_v56 }
 0x1e2   : > { %v498_v58 = vpop.permute.xlu0 %497  ;;  %v530_v60 = vpop.permute.xlu1 %529 }
 0x1e3   : > { %v501_v59 = vsel %vm500_vm3, %v484_v57, %v498_v58 }
 0x1e4   : > { %1445 = vmatprep.mubr.msk.f32.mxu1 %vm681_vm1, %v501_v59 }
 0x1e6   : > { %v534_v61 = vpop.permute.xlu0 %533  ;;  %v647_v16 = vpop.permute.xlu1 %646 }
 0x1e7   : > { %v536_v62 = vsel %vm500_vm3, %v530_v60, %v534_v61  ;;  %v649_v17 = vmul.f32 %v647_v16, %v1835_v23 }
 0x1e8   : > { %1446 = vmatmul.mubr.msk.f32.vlgmr.msra.gmra.mrb[0].mxu1 %vm681_vm1, %v536_v62 }
 0x1ea   : > { %v660_v18 = vpop.permute.xlu0 %659  ;;  %v542_v20 = vpop.permute.xlu1 %541 }
 0x1eb   : > { %v662_v19 = vmul.f32 %v660_v18, %v1835_v23  ;;  %v544_v22 = vmul.f32 %v542_v20, %v1835_v23 }
 0x1ee   : > { %v555_v21 = vpop.permute.xlu0 %554  ;;  %v577_v24 = vpop.permute.xlu1 %576 }
 0x1ef   : > { %v557_v25 = vmul.f32 %v555_v21, %v1835_v23  ;;  %v579_v26 = vmul.f32 %v577_v24, %v1835_v23 }
 0x1f2   : > { %v590_v27 = vpop.permute.xlu0 %589 }
 0x2bb   : > { %v1447_v10 = vpop.f32.mrb[0].mxu1 }
 0x2bc   : > { %v1884_v11 = vsel %vm1874_vm4, %v1447_v10, -3.4028235e+38  ;;  %v813_v12 = vpop.f32.mrb[1].mxu1 }
 0x2bd   : > { %v1888_v13 = vsel %vm1878_vm5, %v813_v12, -3.4028235e+38  ;;  %v827_v14 = vsel %vm681_vm1, %v1884_v11, -inf }
 0x2be   : > { %828 = vmax.xlane.f32.xlu0 %v827_v14  ;;  %v824_v15 = vsel %vm681_vm1, %v1888_v13, -inf }
 0x2bf   : > { %825 = vmax.xlane.f32.xlu1 %v824_v15 }
 0x2d0   : > { %655 = vrot.lane.b32.xlu1 %v1774_v7, %s1646_s24 }
 0x2d4   : > { %642 = vrot.lane.b32.xlu0 %v1780_v8, %s1646_s24  ;;  %651 = vrot.lane.b32.xlu1 %v649_v17, %s1639_s25 }
 0x2d8   : > { %664 = vrot.lane.b32.xlu0 %v662_v19, %s1639_s25  ;;  %537 = vrot.lane.b32.xlu1 %v1780_v8, %s1647_s16 }
 0x2dc   : > { %550 = vrot.lane.b32.xlu0 %v1774_v7, %s1647_s16  ;;  %572 = vrot.lane.b32.xlu1 %v1780_v8, %s1648_s26  ;;  %v592_v8 = vmul.f32 %v590_v27, %v1835_v23 }
 0x2e0   : > { %585 = vrot.lane.b32.xlu0 %v1774_v7, %s1648_s26  ;;  %546 = vrot.lane.b32.xlu1 %v544_v22, %s1639_s25 }
 0x2e4   : > { %559 = vrot.lane.b32.xlu0 %v557_v25, %s1639_s25  ;;  %581 = vrot.lane.b32.xlu1 %v579_v26, %s1639_s25 }
 0x2e8   : > { %594 = vrot.lane.b32.xlu0 %v592_v8, %s1639_s25  ;;  %s1651_s25 = smov 92  }
 0x2ec   : > { %696 = vrot.lane.b32.xlu0 %v1835_v23, %s1649_s3 }
 0x34b   : > { %v829_v28 = vpop.xlane.xlu0 %828 }
 0x34c   : > { %v826_v7 = vpop.xlane.xlu1 %825  ;;  %v831_v49 = vsub.f32 %v1884_v11, %v829_v28 }
 0x34d   : > { %v830_v51 = vsub.f32 %v1888_v13, %v826_v7 }
 0x34e   : > { %v834_v50 = vmul.f32 1.442695, %v831_v49 }
 0x34f   : > { %v643_v29 = vpop.permute.xlu0 %642  ;;  %v832_v52 = vmul.f32 1.442695, %v830_v51 }
 0x350   : > { %v656_v30 = vpop.permute.xlu1 %655  ;;  %v645_v31 = vmul.f32 %v643_v29, %v1835_v23  ;;  %1551 = vpow2.f32 %v834_v50 }
 0x351   : > { %v658_v34 = vmul.f32 %v656_v30, %v1835_v23  ;;  %1553 = vpow2.f32 %v832_v52 }
 0x353   : > { %v665_v32 = vpop.permute.xlu0 %664 }
 0x354   : > { %v652_v33 = vpop.permute.xlu1 %651  ;;  %v667_v38 = vadd.f32 %v665_v32, %v658_v34 }
 0x355   : > { %v654_v35 = vsub.f32 %v645_v31, %v652_v33 }
 0x357   : > { %v551_v36 = vpop.permute.xlu0 %550  ;;  %669 = vrot.lane.b32.xlu1 %v654_v35, %s1650_s4 }
 0x358   : > { %v538_v37 = vpop.permute.xlu1 %537  ;;  %v553_v41 = vmul.f32 %v551_v36, %v1835_v23 }
 0x359   : > { %v540_v42 = vmul.f32 %v538_v37, %v1835_v23 }
 0x35a   : > { %v1552_v53 = vpop.eup %1551 }
 0x35b   : > { %v586_v39 = vpop.permute.xlu0 %585  ;;  %673 = vrot.lane.b32.xlu1 %v667_v38, %s1651_s25  ;;  %v839_v54 = vsel %vm681_vm1, %v1552_v53, 0.0  ;;  %v1554_v55 = vpop.eup %1553 }
 0x35c   : > { %v573_v40 = vpop.permute.xlu1 %572  ;;  %v836_v56 = vsel %vm681_vm1, %v1554_v55, 0.0  ;;  %v588_v57 = vmul.f32 %v586_v39, %v1835_v23  ;;  %v1133_v39 = vld [vmem:[%s2021_s2] sm:$0xff] }
 0x35d   : > { %v575_v59 = vmul.f32 %v573_v40, %v1835_v23  ;;  %v1134_v40 = vld [vmem:[%s2021_s2 + $0x8] sm:$0xff] }
 0x35f   : > { %v560_v43 = vpop.permute.xlu0 %559 }
 0x360   : > { %v562_v44 = vadd.f32 %v560_v43, %v553_v41  ;;  %v547_v45 = vpop.permute.xlu1 %546  ;;  %v1481_v41 = vpack.c.bf16 %v1134_v40, %v1133_v39  ;;  %v1136_v43 = vld [vmem:[%s2021_s2 + $0x18] sm:$0xff] }
 0x361   : > { %v549_v46 = vsub.f32 %v540_v42, %v547_v45  ;;  %v1135_v42 = vld [vmem:[%s2021_s2 + $0x10] sm:$0xff] }
 0x362   : > { %568 = vrot.lane.b32.xlu1 %v562_v44, %s1652_s27  ;;  %1482 = vmatpush3.bf16.msra.mxu0 %v1481_v41  ;;  %v1484_v44 = vpack.c.bf16 %v1136_v43, %v1135_v42  ;;  %s352_s27 = sand.u32 1, %s1621_s10  }
 0x363   : > { %v595_v47 = vpop.permute.xlu0 %594  ;;  %564 = vrot.lane.b32.xlu0 %v549_v46, %s1653_s28  ;;  %1483 = vmatprep.subr.bf16.mxu0 %v1631_v3  ;;  %s1378_s28 = sshll.u32 %s352_s27, 3  ;;  %s1212_s17 = scalar_lea.sflag [#allocation3], %s352_s27 }
 0x364   : > { %v582_v58 = vpop.permute.xlu1 %581  ;;  %v597_v60 = vadd.f32 %v595_v47, %v588_v57 }
 0x365   : > { %v584_v61 = vsub.f32 %v575_v59, %v582_v58 }
 0x366   : > { %1485 = vmatpush3.bf16.msra.mxu0 %v1484_v44 }
 0x367   : > { %v697_v48 = vpop.permute.xlu0 %696 }
 0x368   : > { %699 = vst.msk [vmem:[%s1805_s1] sm:$0xff] %vm681_vm1, %v697_v48  ;;  %1448 = vmatprep.subr.mxu1 %v697_v48 }
 0x369   : > { %1449 = vmatpush3.msra.mxu1 %v697_v48 }
 0x382   : > { %840 = vadd.xlane.f32.xlu0 %v839_v54 }
 0x386   : > { %837 = vadd.xlane.f32.xlu1 %v836_v56 }
 0x397   : > { %603 = vrot.lane.b32.xlu1 %v597_v60, %s1654_s29  ;;  %s1403_s29 = sshll.u32 %s1729_s13, 7  ;;  %s1657_s13 = smov [#allocation2]  }
 0x398   : > { %599 = vrot.lane.b32.xlu0 %v584_v61, %s1655_s14  ;;  %s354_s14 = scalar_lea.vmem [#allocation2], %s1378_s28  ;;  %s1571_s24 = sshll.u32 %s1657_s13, 4  ;;  %s1572_s24 = int_to_ptr.vmem [resolvable:$false] %s1571_s24 }
 0x3c9   : > { %v670_v62 = vpop.permute.xlu1 %669 }
 0x3cd   : > { %v674_v63 = vpop.permute.xlu1 %673 }
 0x3ce   : > { %v676_v0 = vsel %vm500_vm3, %v670_v62, %v674_v63 }
 0x3cf   : > { %1389 = vst.msk [vmem:[%s1799_s22 + $0x10] sm:$0xff] %vm681_vm1, %v676_v0  ;;  %1453 = vmatprep.subr.msk.mxu1 %vm681_vm1, %v676_v0  ;;  %s1656_s22 = smov 72  }
 0x3d4   : > { %v569_v2 = vpop.permute.xlu1 %568 }
 0x3d5   : > { %v565_v1 = vpop.permute.xlu0 %564 }
 0x3d6   : > { %v571_v14 = vsel %vm500_vm3, %v565_v1, %v569_v2 }
 0x40f   : > { %v841_v4 = vpop.xlane.xlu0 %840 }
 0x410   : > { %1555 = vrcp.f32 %v841_v4 }
 0x413   : > { %v838_v5 = vpop.xlane.xlu1 %837  ;;  %v600_v16 = vpop.permute.xlu0 %599 }
 0x414   : > { %1557 = vrcp.f32 %v838_v5 }
 0x417   : > { %v604_v15 = vpop.permute.xlu1 %603 }
 0x418   : > { %v606_v17 = vsel %vm500_vm3, %v600_v16, %v604_v15 }
 0x41a   : > { %v1556_v10 = vpop.eup %1555 }
 0x41b   : > { %v845_v13 = vmul.f32 %v1556_v10, %v1552_v53 }
 0x41e   : > { %v1558_v11 = vpop.eup %1557 }
 0x41f   : > { %v844_v12 = vmul.f32 %v1558_v11, %v1554_v55 }
 0x421   : > { %1450 = vmatprep.mubr.msk.f32.mxu1 %vm681_vm1, %v844_v12 }
 0x422   : > { %1451 = vmatmul.mubr.msk.f32.vlgmr.msra.gmra.mrb[2].mxu1 %vm681_vm1, %v845_v13 }
 0x423   : > { %1454 = vmatpush3.xpose.msk.msra.mxu1 %vm681_vm1, %v676_v0  ;;  %1455 = vmatprep.mubr.msk.f32.mxu1 %vm681_vm1, %v571_v14 }
 0x426   : > { %1456 = vmatmul.mubr.msk.f32.vlgmr.msra.gmra.mrb[4].mxu1 %vm681_vm1, %v606_v17 }
 0x4f5   : > { %v1452_v18 = vpop.f32.mrb[2].mxu1 }
 0x4f6   : > { %v918_v19 = vpop.f32.mrb[3].mxu1 }
 0x4f9   : > { %v1457_v20 = vpop.f32.mrb[4].mxu1 }
 0x4fa   : > { %v1012_v21 = vsel %vm1874_vm4, %v1457_v20, -3.4028235e+38  ;;  %v1002_v22 = vpop.f32.mrb[5].mxu1 }
 0x4fb   : > { %v1011_v24 = vsel %vm1878_vm5, %v1002_v22, -3.4028235e+38  ;;  %v1016_v25 = vsel %vm681_vm1, %v1012_v21, -inf }
 0x4fc   : > { %1017 = vmax.xlane.f32.xlu1 %v1016_v25  ;;  %v1013_v26 = vsel %vm681_vm1, %v1011_v24, -inf }
 0x4fd   : > { %1014 = vmax.xlane.f32.xlu0 %v1013_v26 }
 0x50d   : > { %702 = vrot.lane.b32.xlu1 %v1835_v23, %s1656_s22  ;;  %s1235_s22 = sshll.u32 %s354_s14, 4  ;;  %s1978_s22 = int_to_ptr.vmem [resolvable:$true] %s1235_s22 }
 0x50e   : > { %s1567_s21 = scalar_lea.vmem %s1978_s22, 128  ;;  %p1574_p0 = scmp.lt.s32.totalorder %s1978_s22, %s1572_s24 }
 0x50f   : > { %p1568_p11 = scmp.ne.s32.totalorder %s1978_s22, %s1567_s21 }
 0x511   : > { %p1569_p12 = pnand %p1568_p11, %p1746_p5 }
 0x513   : > { %p1570_p13 = pneg %p1569_p12 }
 0x589   : > { %v1018_v27 = vpop.xlane.xlu1 %1017 }
 0x58a   : > { %v1020_v8 = vsub.f32 %v1012_v21, %v1018_v27  ;;  %v1015_v28 = vpop.xlane.xlu0 %1014 }
 0x58b   : > { %v1019_v7 = vsub.f32 %v1011_v24, %v1015_v28 }
 0x58c   : > { %v1023_v6 = vmul.f32 1.442695, %v1020_v8 }
 0x58d   : > { %v1021_v29 = vmul.f32 1.442695, %v1019_v7  ;;  %v703_v30 = vpop.permute.xlu1 %702 }
 0x58e   : > { %1390 = vst.msk [vmem:[%s1805_s1 + $0x10] sm:$0xff] %vm681_vm1, %v703_v30  ;;  %1458 = vmatprep.subr.mxu1 %v703_v30 }
 0x58f   : > { %1559 = vpow2.f32 %v1021_v29  ;;  %1459 = vmatpush3.msra.mxu1 %v703_v30 }
 0x590   : > { %1561 = vpow2.f32 %v1023_v6 }
 0x599   : > { %v1560_v9 = vpop.eup %1559 }
 0x59a   : > { %v1025_v31 = vsel %vm681_vm1, %v1560_v9, 0.0  ;;  %v1562_v32 = vpop.eup %1561 }
 0x59b   : > { %1026 = vadd.xlane.f32.xlu0 %v1025_v31  ;;  %v1028_v23 = vsel %vm681_vm1, %v1562_v32, 0.0 }
 0x59f   : > { %1029 = vadd.xlane.f32.xlu0 %v1028_v23 }
 0x5b5   : > { %1117 = vrot.lane.b32.xlu0 %v1452_v18, %s1638_s23  ;;  %s1573_s23 = scalar_lea.vmem %s1572_s24, 256 }
 0x5b6   : > { %p1575_p1 = scmp.lt.s32.totalorder %s1573_s23, %s1567_s21 }
 0x5b8   : > { %p1576_p2 = por %p1575_p1, %p1574_p0 }
 0x5ba   : > { %p1577_p3 = pnand %p1576_p2, %p1570_p13 }
 0x628   : > { %v1027_v33 = vpop.xlane.xlu0 %1026 }
 0x629   : > { %1563 = vrcp.f32 %v1027_v33 }
 0x62c   : > { %v1030_v34 = vpop.xlane.xlu0 %1029 }
 0x62d   : > { %1565 = vrcp.f32 %v1030_v34 }
 0x630   : > { %v1118_v47 = vpop.permute.xlu0 %1117 }
 0x631   : > { %v1128_v48 = vsel %vm681_vm1, %v918_v19, %v1118_v47 }
 0x633   : > { %v1564_v35 = vpop.eup %1563 }
 0x634   : > { %v1033_v36 = vmul.f32 %v1564_v35, %v1560_v9 }
 0x636   : > { %1460 = vmatprep.mubr.msk.f32.mxu1 %vm681_vm1, %v1033_v36 }
 0x637   : > { %v1566_v37 = vpop.eup %1565 }
 0x638   : > { %v1034_v38 = vmul.f32 %v1566_v37, %v1562_v32 }
 0x63a   : > { %1461 = vmatmul.mubr.msk.f32.vlgmr.msra.gmra.mrb[6].mxu1 %vm681_vm1, %v1034_v38 }
 0x70d   : > { %v1462_v45 = vpop.f32.mrb[6].mxu1 }
 0x70e   : > { %v1107_v46 = vpop.f32.mrb[7].mxu1 }
 0x70f   : > { %1121 = vrot.lane.b32.xlu1 %v1107_v46, %s1647_s16 }
 0x713   : > { %1125 = vrot.lane.b32.xlu1 %v1462_v45, %s1648_s26  ;;  %s1976_s26 = scalar_lea.hbm %s2026_s7, %s1403_s29 }
 0x781   : > { %v1122_v3 = vpop.permute.xlu1 %1121 }
 0x782   : > { %v1130_v49 = vsel %vm1129_vm6, %v1128_v48, %v1122_v3 }
 0x785   : > { %v1126_v50 = vpop.permute.xlu1 %1125 }
 0x786   : > { %v1132_v51 = vsel %vm1131_vm7, %v1130_v49, %v1126_v50 }
 0x787   : > { %1472 = vmatmul.mubr.msk.f32.vlgmr.msra.gmra.mrb[2].mxu0 %vm398_vm2, %v1132_v51 }
 0x85a   : > { %v1206_v52 = vpop.f32.mrb[2].mxu0 }
 0x85b   : > { %1210 = vst.msk [vmem:[%s354_s14] sm:$0xff] %vm398_vm2, %v1206_v52  ;;  %v1473_v53 = vpop.f32.mrb[3].mxu0 }
 0x85c   : > { %1580 = shalt.err (!%p1577_p3)
}
 0x85d   : > { %s1581_s3 = scalar_lea.hbm %s1976_s26, 128  ;;  %s1585_s27 = scalar_lea.hbm %s2026_s7, 256 }
 0x85e   : > { %p1582_p4 = scmp.ne.s32.totalorder %s1976_s26, %s1581_s3  ;;  %p1586_p9 = scmp.lt.u32.totalorder %s1976_s26, %s2026_s7 }
 0x85f   : > { %p1587_p10 = scmp.lt.u32.totalorder %s1585_s27, %s1581_s3  ;;  %p1589_p12 = scmp.lt.u32.totalorder %s1581_s3, %s1976_s26 }
 0x860   : > { %p1583_p7 = pnand %p1582_p4, %p1746_p5 }
 0x861   : > { %p1588_p11 = por %p1587_p10, %p1586_p9 }
 0x862   : > { %p1584_p8 = pneg %p1583_p7 }
 0x863   : > { %p1590_p13 = por %p1589_p12, %p1588_p11 }
 0x865   : > { %p1591_p0 = pnand %p1590_p13, %p1584_p8 }
 0x867   : > { %1594 = shalt.err (!%p1591_p0)
}
 0x868   : > { %1486 = dma.vmem_to_hbm [thread:$0]  (%p1746_p5), %s1978_s22, 128, %s1976_s26, %s1212_s17  }
 0x869 PF: > { %p1492_p1 = scmp.ge.s32.totalorder %s1629_s12, 2  ;;  %s1253_s14 = sand.u32 1, %s1617_s30  }
 0x86a   : > { %s1254_s16 = scalar_lea.sflag [#allocation3], %s1253_s14 }
 0x86b   : > { %p1489_p2 = pnand %p1492_p1, %p1750_p6 }
 0x86d   : > { %1612 = dma.done.wait (!%p1489_p2), %s1254_s16, 128  }
 0x86e   : > { %1614 = vsyncadd (!%p1489_p2), %s1254_s16, 4294967168  ;;  %p20_p3 = scmp.ge.s32.totalorder %s1733_s15, 4   ;;  %s2044_s30 = smov %s1621_s10 }
 0x86f   : > { %s2045_s10 = smov %s1625_s11  ;;  %s2046_s11 = smov %s1744_s18 }
 0x870   : > { %s2047_s12 = smov %s1733_s15  ;;  %22 = sbr.rel (!%p20_p3) target bundleno = 7 (0x7), region = 115 }
 0x877   :  { %1275 = vsyncpa [#allocation3], 1 }
 0x878   :  { %1277 = vsyncpa [#allocation3 + $0x1], 1 }

</bundles_post_ra>
